<compile_context>
chip_gen: v5e
topology: v5e:2x2
jax: 0.10.0
libtpu: 0.0.40
codegen_flags: <defaults>
</compile_context>

<pallas_src>
import functools

import numpy as np

import jax
import jax.numpy as jnp
from jax import lax
from jax.experimental import pallas as pl
from jax.experimental.pallas import tpu as pltpu


_LANE = 128      # vreg lane width
_SUBLANE = 8     # vreg sublane count (f32)
_TB_MAX = 8192   # max batch-tile width (lanes)
_NC = 2          # core-parallel partial-sum splits (v7x has 2 TensorCores)


def _round_up(x, m):
    return (x + m - 1) // m * m


def _gensheimer_kernel(intervals_ref, preds_ref, events_ref, durations_ref,
                       out_ref, *, eps, event_weight):
    """Processes one (K, TB) batch tile; batch on lanes, K on sublanes."""
    i = pl.program_id(1)

    # Zero this core's resident partial-sum block at the start of its batch loop.
    @pl.when(i == 0)
    def _():
        out_ref[...] = jnp.zeros_like(out_ref)

    intervals = intervals_ref[...]                       # [K, 1]  f32
    preds = preds_ref[...].astype(jnp.float32)           # [K, TB] (bf16 ok in HBM)
    events = events_ref[...]                             # [1, TB] f32
    durations = durations_ref[...]                       # [1, TB] f32

    K = preds.shape[0]

    # mask[k, b] = intervals[k] <= durations[b]; monotone 1..1 0..0 over k
    # because intervals are sorted ascending.
    mask = intervals <= durations                        # [K, TB] bool

    # PyTorch: bucket = argmin(mask.float(), dim=1) - 1 ; bucket == -1 -> K-1.
    # For a monotone mask this is exactly sum(mask) - 1 (with -1 -> K-1).
    bucket = jnp.sum(mask.astype(jnp.int32), axis=0, keepdims=True) - 1  # [1, TB]
    bucket = jnp.where(bucket < 0, K - 1, bucket)
    kk = lax.broadcasted_iota(jnp.int32, preds.shape, 0)                 # [K, TB]
    surv = jnp.where(kk == bucket, events, 0.0)          # one_hot(bucket) * events

    p = jax.nn.sigmoid(preds)

    # Fused single log (3 -> 2 transcendentals per element):
    #   log1 = log(max(1 + (1-mask)*(p-1), eps))             active where mask==0
    #   log2 = surv*ew * log(max(1 - surv*p, eps))           active where mask==1
    # The two regions are disjoint (the bucket position always has mask==1
    # whenever intervals[0] <= duration), so:
    factor = jnp.where(mask, surv * event_weight, 1.0)
    arg = jnp.where(mask, 1.0 - surv * p, p)
    contrib = factor * jnp.log(jnp.maximum(arg, eps))

    out_ref[...] += jnp.sum(contrib)


def gensheimer_loss(preds, events, durations, *, eps=1e-6, num_intervals=20,
                    interval_duration=6.0, ticks=None, reduction="mean",
                    event_weight=None):
    """Pallas TPU implementation of GensheimerLoss.forward."""
    reduction = reduction.lower()
    assert reduction in ("mean", "sum")
    # NOTE: PyTorch's `if event_weight:` maps 0.0 -> 1.0; here only None is
    # treated as "unset" (per review).
    ew = 1.0 if event_weight is None else float(event_weight)

    if ticks is not None:
        iv = np.asarray(list(ticks)[:-1], dtype=np.float32)
        assert iv.ndim == 1 and np.all(np.diff(iv) >= 0.0), (
            "ticks must be sorted ascending (bucket = sum(mask)-1 relies on it)")
        num_intervals = int(iv.shape[0])
    else:
        iv = np.arange(num_intervals, dtype=np.float32) * float(interval_duration)

    B, K = preds.shape
    assert K == num_intervals

    # ---- lane-dense layout: batch on the lane axis ---------------------------
    preds_t = jnp.transpose(preds)                              # [K, B], keep dtype
    events_r = jnp.reshape(events, (1, B)).astype(jnp.float32)  # [1, B]
    durs_r = jnp.reshape(durations, (1, B)).astype(jnp.float32) # [1, B]

    nc = _NC
    tb = min(_TB_MAX, _round_up(pl.cdiv(B, nc), _LANE))
    b_pad = _round_up(B, nc * tb)
    nb_per_core = (b_pad // tb) // nc

    if b_pad != B:
        pad = b_pad - B
        # Padding rows contribute exactly zero: duration beyond the last
        # interval -> mask all ones -> factor 0 and log(1); events = 0.
        big_dur = float(iv[-1]) + 1.0 if iv.size else 1.0
        preds_t = jnp.pad(preds_t, ((0, 0), (0, pad)))
        events_r = jnp.pad(events_r, ((0, 0), (0, pad)))
        durs_r = jnp.pad(durs_r, ((0, 0), (0, pad)), constant_values=big_dur)

    intervals_2d = jnp.asarray(iv, dtype=jnp.float32).reshape(K, 1)

    kernel = functools.partial(_gensheimer_kernel, eps=float(eps),
                               event_weight=ew)

    pred_bytes = K * b_pad * preds_t.dtype.itemsize
    cost = pl.CostEstimate(
        flops=16 * b_pad * K,
        transcendentals=2 * b_pad * K,
        bytes_accessed=pred_bytes + 2 * b_pad * 4 + K * 4
                       + nc * _SUBLANE * _LANE * 4,
    )

    batch_idx = lambda c, i: (0, c * nb_per_core + i)

    # TODO(synk): for tiny batches (B << 128) a pure-jnp fallback avoids the
    # pallas_call dispatch overhead; the kernel only pays off at large B.
    out = pl.pallas_call(
        kernel,
        out_shape=jax.ShapeDtypeStruct((nc * _SUBLANE, _LANE), jnp.float32),
        grid_spec=pltpu.PrefetchScalarGridSpec(
            num_scalar_prefetch=0,
            grid=(nc, nb_per_core),
            in_specs=[
                pl.BlockSpec((K, 1), lambda c, i: (0, 0)),   # intervals (resident)
                pl.BlockSpec((K, tb), batch_idx),            # preds  [K, B_pad]
                pl.BlockSpec((1, tb), batch_idx),            # events [1, B_pad]
                pl.BlockSpec((1, tb), batch_idx),            # durations
            ],
            out_specs=pl.BlockSpec((_SUBLANE, _LANE), lambda c, i: (c, 0)),
        ),
        compiler_params=pltpu.CompilerParams(
            dimension_semantics=("parallel", "arbitrary"),
            vmem_limit_bytes=32 * 1024 * 1024,
        ),
        cost_estimate=cost,
    )(intervals_2d, preds_t, events_r, durs_r)

    partials = out.reshape(nc, _SUBLANE, _LANE)[:, 0, 0]      # per-core partial sums
    total = jnp.sum(partials)
    if reduction == "mean":
        return -total / jnp.float32(B)     # divide by TRUE batch size
    return -total


def _reference_loss(preds, events, durations, *, eps=1e-6,
                    interval_duration=6.0, reduction="mean", event_weight=None):
    """Pure-JAX reference mirroring the PyTorch forward (unfused), for validation."""
    B, K = preds.shape
    ew = 1.0 if event_weight is None else float(event_weight)
    intervals = jnp.arange(K, dtype=jnp.float32) * interval_duration
    mask = (intervals[None, :] <= durations.reshape(-1, 1)).astype(jnp.float32)
    bucket = jnp.argmin(mask, axis=1) - 1
    bucket = jnp.where(bucket == -1, K - 1, bucket)
    survivals = jax.nn.one_hot(bucket, K, dtype=jnp.float32) * events.reshape(-1, 1)
    mask_neg = 1.0 - mask
    p = jax.nn.sigmoid(preds.astype(jnp.float32))
    weights = survivals * ew
    log1 = jnp.log(jnp.maximum(1.0 + mask_neg * (p - 1.0), eps))
    log2 = jnp.log(jnp.maximum(1.0 - survivals * p, eps)) * weights
    summed = jnp.sum(log1 + log2, axis=1)
    red = jnp.mean(summed) if reduction == "mean" else jnp.sum(summed)
    return -red


if __name__ == "__main__":
    B, K = 8, 20
    key = jax.random.PRNGKey(0)
    k1, k2, k3 = jax.random.split(key, 3)

    preds = jax.random.normal(k1, (B, K), dtype=jnp.float32)
    events = (jax.random.uniform(k2, (B,)) > 0.4).astype(jnp.float32)
    # durations spanning the interval range (and beyond, to hit the clamp path)
    durations = jax.random.uniform(k3, (B,), minval=0.0, maxval=130.0)

    loss = gensheimer_loss(preds, events, durations,
                           num_intervals=K, interval_duration=6.0,
                           reduction="mean")
    loss = jax.block_until_ready(loss)

    ref = _reference_loss(preds, events, durations,
                          interval_duration=6.0, reduction="mean")
    assert jnp.allclose(loss, ref, rtol=1e-5, atol=1e-5), (loss, ref)

    print("KERNEL_OK")
</pallas_src>

<mosaic_0001>
module attributes {stable_mosaic.version = 11 : i64} {
  func.func @_gensheimer_kernel(%arg0: i32, %arg1: i32, %arg2: memref<20x1xf32, #tpu.memory_space<vmem>>, %arg3: memref<20x128xf32, #tpu.memory_space<vmem>>, %arg4: memref<1x128xf32, #tpu.memory_space<vmem>>, %arg5: memref<1x128xf32, #tpu.memory_space<vmem>>, %arg6: memref<8x128xf32, #tpu.memory_space<vmem>>) attributes {dimension_semantics = [#tpu.dimension_semantics<parallel>, #tpu.dimension_semantics<arbitrary>], iteration_bounds = array<i64: 2, 1>, scalar_prefetch = 0 : i64, scratch_operands = 0 : i64, tpu.core_type = #tpu.core_type<tc>, window_params = [{pipeline_mode = #tpu.pipeline_mode<synchronous>, transform_indices = @transform_0, window_bounds = array<i64: 20, 1>}, {transform_indices = @transform_1, window_bounds = array<i64: 20, 128>}, {transform_indices = @transform_2, window_bounds = array<i64: 1, 128>}, {transform_indices = @transform_3, window_bounds = array<i64: 1, 128>}, {transform_indices = @transform_4, window_bounds = array<i64: 8, 128>}]} {
    %c0_i32 = arith.constant 0 : i32
    %0 = arith.cmpi eq, %arg1, %c0_i32 : i32
    %1 = arith.extui %0 : i1 to i32
    %c0_i32_0 = arith.constant 0 : i32
    %2 = arith.cmpi ne, %1, %c0_i32_0 : i32
    scf.if %2 {
      %cst_20 = arith.constant 0.000000e+00 : f32
      %51 = vector.broadcast %cst_20 : f32 to vector<8x128xf32>
      %c0_21 = arith.constant 0 : index
      %c0_22 = arith.constant 0 : index
      %52 = vector.load %arg6[%c0_21, %c0_22] : memref<8x128xf32, #tpu.memory_space<vmem>>, vector<8x128xf32>
      tpu.vector_store %arg6[%c0_21, %c0_22], %51 {strides = array<i32>} : memref<8x128xf32, #tpu.memory_space<vmem>>, vector<8x128xf32>,
    } else {
    }
    %c0 = arith.constant 0 : index
    %c0_1 = arith.constant 0 : index
    %3 = vector.load %arg2[%c0, %c0_1] : memref<20x1xf32, #tpu.memory_space<vmem>>, vector<20x1xf32>
    %c0_2 = arith.constant 0 : index
    %c0_3 = arith.constant 0 : index
    %4 = vector.load %arg3[%c0_2, %c0_3] : memref<20x128xf32, #tpu.memory_space<vmem>>, vector<20x128xf32>
    %c0_4 = arith.constant 0 : index
    %c0_5 = arith.constant 0 : index
    %5 = vector.load %arg4[%c0_4, %c0_5] : memref<1x128xf32, #tpu.memory_space<vmem>>, vector<1x128xf32>
    %c0_6 = arith.constant 0 : index
    %c0_7 = arith.constant 0 : index
    %6 = vector.load %arg5[%c0_6, %c0_7] : memref<1x128xf32, #tpu.memory_space<vmem>>, vector<1x128xf32>
    %7 = vector.broadcast %3 : vector<20x1xf32> to vector<20x128xf32>
    %8 = vector.broadcast %6 : vector<1x128xf32> to vector<20x128xf32>
    %9 = arith.cmpf ole, %7, %8 : vector<20x128xf32>
    %10 = arith.extui %9 : vector<20x128xi1> to vector<20x128xi32>
    %cst = arith.constant dense<0> : vector<128xi32>
    %11 = vector.multi_reduction <add>, %10, %cst [0] : vector<20x128xi32> to vector<128xi32>
    %12 = vector.shape_cast %11 : vector<128xi32> to vector<1x128xi32>
    %c1_i32 = arith.constant 1 : i32
    %13 = vector.broadcast %c1_i32 : i32 to vector<1x128xi32>
    %14 = arith.subi %12, %13 : vector<1x128xi32>
    %c0_i32_8 = arith.constant 0 : i32
    %15 = vector.broadcast %c0_i32_8 : i32 to vector<1x128xi32>
    %16 = arith.cmpi slt, %14, %15 : vector<1x128xi32>
    %c19_i32 = arith.constant 19 : i32
    %17 = vector.broadcast %c19_i32 : i32 to vector<1x128xi32>
    %18 = arith.select %16, %17, %14 : vector<1x128xi1>, vector<1x128xi32>
    %19 = tpu.iota {dimensions = array<i32: 0>} : vector<20x128xi32>
    %20 = vector.broadcast %18 : vector<1x128xi32> to vector<20x128xi32>
    %21 = arith.cmpi eq, %19, %20 : vector<20x128xi32>
    %cst_9 = arith.constant 0.000000e+00 : f32
    %22 = vector.shape_cast %5 : vector<1x128xf32> to vector<1x128xf32>
    %23 = vector.broadcast %22 : vector<1x128xf32> to vector<20x128xf32>
    %24 = vector.broadcast %cst_9 : f32 to vector<20x128xf32>
    %25 = arith.select %21, %23, %24 : vector<20x128xi1>, vector<20x128xf32>
    %26 = arith.negf %4 : vector<20x128xf32>
    %27 = math.exp %26 : vector<20x128xf32>
    %cst_10 = arith.constant 1.000000e+00 : f32
    %28 = vector.broadcast %cst_10 : f32 to vector<20x128xf32>
    %29 = arith.addf %28, %27 : vector<20x128xf32>
    %30 = arith.divf %28, %29 : vector<20x128xf32>
    %cst_11 = arith.constant 1.000000e+00 : f32
    %31 = vector.broadcast %cst_11 : f32 to vector<20x128xf32>
    %32 = arith.mulf %25, %31 : vector<20x128xf32>
    %cst_12 = arith.constant 1.000000e+00 : f32
    %33 = vector.broadcast %cst_12 : f32 to vector<20x128xf32>
    %34 = arith.select %9, %32, %33 : vector<20x128xi1>, vector<20x128xf32>
    %35 = arith.mulf %25, %30 : vector<20x128xf32>
    %cst_13 = arith.constant 1.000000e+00 : f32
    %36 = vector.broadcast %cst_13 : f32 to vector<20x128xf32>
    %37 = arith.subf %36, %35 : vector<20x128xf32>
    %38 = arith.select %9, %37, %30 : vector<20x128xi1>, vector<20x128xf32>
    %cst_14 = arith.constant 9.99999997E-7 : f32
    %39 = vector.broadcast %cst_14 : f32 to vector<20x128xf32>
    %40 = arith.maximumf %38, %39 : vector<20x128xf32>
    %41 = math.log %40 : vector<20x128xf32>
    %42 = arith.mulf %34, %41 : vector<20x128xf32>
    %c0_15 = arith.constant 0 : index
    %c0_16 = arith.constant 0 : index
    %43 = vector.load %arg6[%c0_15, %c0_16] : memref<8x128xf32, #tpu.memory_space<vmem>>, vector<8x128xf32>
    %44 = vector.shape_cast %42 : vector<20x128xf32> to vector<1x20x128xf32>
    %cst_17 = arith.constant dense<0.000000e+00> : vector<1xf32>
    %45 = vector.multi_reduction <add>, %44, %cst_17 [1, 2] : vector<1x20x128xf32> to vector<1xf32>
    %46 = vector.shape_cast %45 : vector<1xf32> to vector<1x1x1xf32>
    %47 = vector.extract %46[0, 0, 0] : f32 from vector<1x1x1xf32>
    %48 = vector.broadcast %47 : f32 to vector<8x128xf32>
    %49 = arith.addf %43, %48 : vector<8x128xf32>
    %c0_18 = arith.constant 0 : index
    %c0_19 = arith.constant 0 : index
    %50 = vector.load %arg6[%c0_18, %c0_19] : memref<8x128xf32, #tpu.memory_space<vmem>>, vector<8x128xf32>
    tpu.vector_store %arg6[%c0_18, %c0_19], %49 {strides = array<i32>} : memref<8x128xf32, #tpu.memory_space<vmem>>, vector<8x128xf32>,
    return
  }
  func.func @transform_0(%arg0: i32, %arg1: i32) -> (i32, i32) {
    %c0_i32 = arith.constant 0 : i32
    %c0_i32_0 = arith.constant 0 : i32
    %c0_i32_1 = arith.constant 0 : i32
    return %c0_i32, %c0_i32_0 : i32, i32
  }
  func.func @transform_1(%arg0: i32, %arg1: i32) -> (i32, i32) {
    %c1_i32 = arith.constant 1 : i32
    %0 = arith.muli %arg0, %c1_i32 : i32
    %1 = arith.addi %0, %arg1 : i32
    %c0_i32 = arith.constant 0 : i32
    %c0_i32_0 = arith.constant 0 : i32
    return %c0_i32, %1 : i32, i32
  }
  func.func @transform_2(%arg0: i32, %arg1: i32) -> (i32, i32) {
    %c1_i32 = arith.constant 1 : i32
    %0 = arith.muli %arg0, %c1_i32 : i32
    %1 = arith.addi %0, %arg1 : i32
    %c0_i32 = arith.constant 0 : i32
    %c0_i32_0 = arith.constant 0 : i32
    return %c0_i32, %1 : i32, i32
  }
  func.func @transform_3(%arg0: i32, %arg1: i32) -> (i32, i32) {
    %c1_i32 = arith.constant 1 : i32
    %0 = arith.muli %arg0, %c1_i32 : i32
    %1 = arith.addi %0, %arg1 : i32
    %c0_i32 = arith.constant 0 : i32
    %c0_i32_0 = arith.constant 0 : i32
    return %c0_i32, %1 : i32, i32
  }
  func.func @transform_4(%arg0: i32, %arg1: i32) -> (i32, i32) {
    %c0_i32 = arith.constant 0 : i32
    %c0_i32_0 = arith.constant 0 : i32
    return %arg0, %c0_i32 : i32, i32
  }
}

</mosaic_0001>

<bundles_post_ra>
// kernel: tpu_custom_call.1
= control target key start
LH: loop header
LB: loop body
LE: loop exit
PB: predicated region body
PF: predicated region fallthrough
CT: control target
= control target key end

     0   :  { %9 = vsyncpa [#allocation3], 0  ;;  %s1035_s0 = inlined_call_operand.vmem [shape: f32[20,1], index: 0, kind: input, shape index: {}]   ;;  %s1036_s1 = inlined_call_operand.hbm [shape: f32[20,256], index: 1, kind: input, shape index: {}]   ;;  %s1037_s2 = inlined_call_operand.vmem [shape: f32[1,256], index: 2, kind: input, shape index: {}]   ;;  %s1038_s3 = inlined_call_operand.vmem [shape: f32[1,256], index: 3, kind: input, shape index: {}]   ;;  %s1039_s4 = inlined_call_operand.hbm [shape: f32[16,128], index: 4, kind: output, shape index: {}]  }
   0x1   :  { %11 = vsyncpa [#allocation3 + $0x1], 0 }
   0x2   :  { %12 = vsyncpa [#allocation4], 0 }
   0x3   :  { %14 = vsyncpa [#allocation4 + $0x1], 0  ;;  %s799_s15 = smov 0   ;;  %s801_s16 = smov 0  }
   0x4   :  { %s803_s17 = smov 0   ;;  %s805_s18 = smov 0  }
   0x5   :  { %s807_s19 = smov 0   ;;  %s809_s20 = smov 0  }
   0x6 LB: > { %s548_s21 = sadd.s32 4294967295, %s768_s20   ;;  %s549_s22 = sadd.s32 4294967294, %s768_s20   ;;  %s768_s20 = sphi %s809_s20, %s20_s20   ;;  %s764_s19 = sphi %s807_s19, %s1054_s19   ;;  %s760_s18 = sphi %s805_s18, %s1053_s18   ;;  %s756_s17 = sphi %s803_s17, %s1052_s17   ;;  %s752_s16 = sphi %s801_s16, %s1051_s16   ;;  %s748_s15 = sphi %s799_s15, %s1050_s15  }
   0x7   : > { %s32_s23 = sadd.s32 1, %s764_s19  ;;  %s62_s24 = sadd.s32 1, %s756_s17 }
   0x8   : > { %p34_p0 = scmp.ge.s32.totalorder %s32_s23, 2  ;;  %p69_p1 = scmp.ne.s32.totalorder %s756_s17, %s752_s16 }
   0x9   : > { %p70_p2 = scmp.eq.s32.totalorder %s768_s20, 0  ;;  %p75_p3 = scmp.ne.s32.totalorder %s752_s16, %s748_s15 }
   0xa   : > { %s1056_s23 = smov (%p34_p0, %s32_s23), 0  ;;  %p76_p5 = scmp.eq.s32.totalorder %s548_s21, 0 }
   0xb   : > { %p840_p4 = por %p70_p2, %p69_p1  ;;  %s59_s26 = ssub.s32 %s764_s19, %s1056_s23 }
   0xc   : > { %p155_p6 = scmp.eq.s32.totalorder %s548_s21, 1  ;;  %p60_p7 = scmp.eq.s32.totalorder %s59_s26, 0 }
   0xd   : > { %p846_p8 = por %p76_p5, %p75_p3  ;;  %p161_p10 = scmp.eq.s32.totalorder %s549_s22, 1 }
   0xe   : > { %p850_p9 = por %p155_p6, %p69_p1  ;;  %p551_p12 = scmp.ge.s32.totalorder %s768_s20, 2 }
   0xf   : > { %s855_s29 = scalar_select %p60_p7, %s756_s17, %s62_s24  }
  0x10   : > { %p857_p11 = por %p161_p10, %p75_p3  ;;  %p579_p13 = scmp.lt.s32.totalorder %s768_s20, 2 }
  0x11   : > { %s184_s5 = sand.u32 1, %s756_s17   ;;  %s552_s7 = sshll.u32 %s764_s19, 3 }
  0x12   : > { %s563_s6 = smul.u32 24, %s184_s5  ;;  %p572_p0 = pnand %p579_p13, %p840_p4 }
  0x13   : > { %s193_s10 = scalar_lea.hbm %s1036_s1, %s552_s7  ;;  %s185_s14 = scalar_lea.sflag [#allocation3], %s184_s5 }
  0x14   : > { %s194_s11 = sshll.u32 %s193_s10, 4  ;;  %s188_s12 = scalar_lea.vmem [#allocation2], %s563_s6  ;;  %s195_s11 = int_to_ptr.hbm [resolvable:$true] %s194_s11 }
  0x15   : > { %s196_s13 = sshll.u32 %s188_s12, 4  ;;  %s770_s21 = smov 256   ;;  %s197_s13 = int_to_ptr.vmem [resolvable:$true] %s196_s13 }
  0x16   : > { %s771_s22 = smov 128   ;;  %s772_s24 = smov 8  }
  0x17   : > { %574 = dma.hbm_to_vmem [thread:$0]  (!%p572_p0), %s195_s11, 384, %s197_s13, %s185_s14, %s770_s21, %s771_s22, %s772_s24  }
  0x18   : > { %p553_p1 = scmp.ge.s32.totalorder %s768_s20, 1  ;;  %p220_p2 = scmp.lt.s32.totalorder %s768_s20, 3 }
  0x1a   : > { %p221_p3 = pnand %p553_p1, %p220_p2 }
  0x1b   : > { %s873_s25 = sand.u32 (!%p221_p3), 1, %s752_s16  }
  0x1c   : > { %224 = sbr.rel (%p221_p3) target bundleno = 389 (0x185), region = 36  ;;  %s227_s6 = scalar_lea.sflag (!%p221_p3), [#allocation3], %s873_s25 }
  0x1d   : > { %s564_s26 = smul.u32 (!%p221_p3), 24, %s873_s25 }
  0x1f   : > { %s230_s7 = scalar_lea.vmem (!%p221_p3), [#allocation2], %s564_s26 }
  0x21   : > { %739 = dma.done.wait (%p846_p8), %s227_s6, 384  }
  0x22   : > { %741 = vsyncadd (%p846_p8), %s227_s6, 4294966912  ;;  %p266_p4 = scmp.lt.s32.totalorder %s760_s18, 1  ;;  %v773_v0 = vmov 0   ;;  %v280_v1 = vld [vmem:[%s1035_s0] sm:$0xff]  ;;  %v282_v2 = vld [vmem:[%s1035_s0 + $0x10] sm:$0xf]  ;;  %v325_v33 = vlaneseq }
  0x23   : > { %634 = vset.pattern.permute.xlu0 %v773_v0  ;;  %635 = vset.pattern.permute.xlu1 %v773_v0  ;;  %v281_v3 = vld [vmem:[%s1035_s0 + $0x8] sm:$0xff]  ;;  %v283_v5 = vld [vmem:[%s230_s7] sm:$0xff]  ;;  %vm312_vm2 = vcmask 1043456   ;;  %s560_s8 = sshll.u32 %s760_s18, 3  ;;  %s436_s21 = scalar_lea.sflag [#allocation4], %s873_s25 }
  0x24   : > { %s883_s5 = scalar_select %p266_p4, %s760_s18, 1  ;;  %290 = vperm.xlu0 %634, %v280_v1   ;;  %300 = vperm.xlu1 %635, %v282_v2   ;;  %v285_v4 = vld [vmem:[%s230_s7 + $0x10] sm:$0xf]  ;;  %v284_v6 = vld [vmem:[%s230_s7 + $0x8] sm:$0xff]  ;;  %v556_v8 = vmul.f32 -1.442695, %v283_v5 }
  0x25   : > { %v558_v7 = vmul.f32 -1.442695, %v285_v4  ;;  %v557_v9 = vmul.f32 -1.442695, %v284_v6  ;;  %v326_v39 = vshrl.u32 %v325_v33, 7  ;;  %s446_s11 = scalar_lea.hbm %s1039_s4, %s560_s8  ;;  %s706_s6 = scalar_lea.hbm %s1039_s4, 16 }
  0x26   : > { %s273_s13 = scalar_lea.vmem %s1038_s3, %s883_s5  ;;  %s268_s22 = scalar_lea.vmem %s1037_s2, %s883_s5 }
  0x27   : > { %638 = vpow2.f32 %v558_v7  ;;  %v910_v18 = vld [vmem:[%s273_s13] ss:$0 sm:$0xff]  ;;  %v328_v56 = vadd.s32 16, %v326_v39  ;;  %v327_v61 = vadd.s32 8, %v326_v39  ;;  %s554_s5 = sshll.u32 %s873_s25, 3  ;;  %s450_s13 = sshll.u32 %s446_s11, 4  ;;  %s451_s13 = int_to_ptr.hbm [resolvable:$true] %s450_s13 }
  0x28   : > { %640 = vpow2.f32 %v556_v8  ;;  %v637_v2 = vld [vmem:[%s268_s22] ss:$0 sm:$0xff]  ;;  %s263_s27 = scalar_lea.vmem [#allocation5], %s554_s5  ;;  %s700_s22 = sshra.s32 %s451_s13, 4  ;;  %s701_s22 = int_to_ptr.hbm [resolvable:$true] %s700_s22 }
  0x29   : > { %642 = vpow2.f32 %v557_v9  ;;  %s448_s12 = sshll.u32 %s263_s27, 4  ;;  %s702_s24 = scalar_lea.hbm %s701_s22, 8  ;;  %s449_s12 = int_to_ptr.vmem [resolvable:$true] %s448_s12 }
  0x2a   : > { %p703_p5 = scmp.ne.s32.totalorder %s701_s22, %s702_s24  ;;  %p707_p8 = scmp.lt.s32.totalorder %s701_s22, %s1039_s4 }
  0x2b   : > { %p708_p10 = scmp.lt.s32.totalorder %s706_s6, %s702_s24 }
  0x2c   : > { %295 = vperm.xlu0 %634, %v281_v3   ;;  %p704_p6 = pnand %p703_p5, %p850_p9 }
  0x2d   : > { %v639_v10 = vpop.eup %638  ;;  %p709_p13 = por %p708_p10, %p707_p8 }
  0x2e   : > { %v641_v11 = vpop.eup %640  ;;  %v349_v13 = vadd.f32 1.0, %v639_v10  ;;  %p705_p7 = pneg %p704_p6 }
  0x2f   : > { %v643_v12 = vpop.eup %642  ;;  %v902_v14 = vadd.f32 1.0, %v641_v11 }
  0x30   : > { %v904_v15 = vadd.f32 1.0, %v643_v12  ;;  %644 = vrcp.f32 %v349_v13  ;;  %vm385_vm4 = vweird.f32 %v349_v13  ;;  %v389_v42 = vand.u32 2147483647, %v349_v13  ;;  %p710_p0 = pnand %p709_p13, %p705_p7 }
  0x31   : > { %646 = vrcp.f32 %v902_v14  ;;  %v391_v44 = vand.u32 2147483648, %v349_v13  ;;  %vm355_vm6 = vweird.f32 %v902_v14  ;;  %v361_v47 = vand.u32 2147483648, %v902_v14 }
  0x32   : > { %648 = vrcp.f32 %v904_v15  ;;  %vm370_vm8 = vweird.f32 %v904_v15  ;;  %v359_v51 = vand.u32 2147483647, %v902_v14  ;;  %v376_v52 = vand.u32 2147483648, %v904_v15 }
  0x33   : > { %v374_v55 = vand.u32 2147483647, %v904_v15  ;;  %vm390_vm12 = vcmp.eq.f32.partialorder %v389_v42, 8.507059e+37  ;;  %v392_v60 = vor.u32 1.1754944e-38, %v391_v44  ;;  %v362_v62 = vor.u32 1.1754944e-38, %v361_v47 }
  0x34   : > { %vm360_vm14 = vcmp.eq.f32.partialorder %v359_v51, 8.507059e+37  ;;  %v377_v1 = vor.u32 1.1754944e-38, %v376_v52 }
  0x35   : > { %vm375_vm15 = vcmp.eq.f32.partialorder %v374_v55, 8.507059e+37 }
  0x36   : > { %v916_v19 = vpop.eup %644 }
  0x37   : > { %v647_v21 = vpop.eup %646  ;;  %v381_v26 = vmul.f32 %v916_v19, %v349_v13  ;;  %vm386_vm5 = vweird.f32 %v916_v19 }
  0x38   : > { %v925_v23 = vpop.eup %648  ;;  %v351_v29 = vmul.f32 %v647_v21, %v902_v14  ;;  %vm356_vm7 = vweird.f32 %v647_v21  ;;  %vm948_vm10 = vmor %vm385_vm4, %vm386_vm5 }
  0x39   : > { %v366_v30 = vmul.f32 %v925_v23, %v904_v15  ;;  %v382_v32 = vsub.f32 1.0, %v381_v26  ;;  %vm371_vm9 = vweird.f32 %v925_v23  ;;  %vm954_vm11 = vmor %vm355_vm6, %vm356_vm7 }
  0x3a   : > { %v352_v35 = vsub.f32 1.0, %v351_v29  ;;  %vm960_vm13 = vmor %vm370_vm8, %vm371_vm9 }
  0x3b   : > { %v367_v36 = vsub.f32 1.0, %v366_v30  ;;  %v383_v38 = vmul.f32 %v916_v19, %v382_v32 }
  0x3c   : > { %v353_v41 = vmul.f32 %v647_v21, %v352_v35 }
  0x3d   : > { %v368_v43 = vmul.f32 %v925_v23, %v367_v36  ;;  %v384_v46 = vadd.f32 %v916_v19, %v383_v38 }
  0x3e   : > { %v354_v50 = vadd.f32 %v647_v21, %v353_v41 }
  0x3f   : > { %v369_v54 = vadd.f32 %v925_v23, %v368_v43  ;;  %v388_v59 = vsel %vm948_vm10, %v916_v19, %v384_v46 }
  0x40   : > { %v393_v4 = vsel %vm390_vm12, %v392_v60, %v388_v59 }
  0x41   : > { %v373_v3 = vsel %vm960_vm13, %v925_v23, %v369_v54 }
  0x42   : > { %v378_v7 = vsel %vm375_vm15, %v377_v1, %v373_v3 }
  0x96   : > { %v906_v16 = vpop.permute.xlu0 %290  ;;  %v908_v17 = vpop.permute.xlu1 %300 }
  0x97   : > { %vm308_vm0 = vcmp.le.f32.partialorder %v908_v17, %v910_v18  ;;  %vm306_vm1 = vcmp.le.f32.partialorder %v906_v16, %v910_v18 }
  0x98   : > { %v311_v20 = vsel %vm308_vm0, 1, %v773_v0  ;;  %v309_v24 = vsel %vm306_vm1, 1, %v773_v0 }
  0x99   : > { %v313_v27 = vsel %vm312_vm2, %v311_v20, 0 }
  0x9e   : > { %v923_v22 = vpop.permute.xlu0 %295 }
  0x9f   : > { %vm307_vm3 = vcmp.le.f32.partialorder %v923_v22, %v910_v18 }
  0xa0   : > { %v310_v25 = vsel %vm307_vm3, 1, %v773_v0  ;;  %v358_v0 = vsel %vm954_vm11, %v647_v21, %v354_v50 }
  0xa1   : > { %v314_v28 = vadd.s32 %v310_v25, %v309_v24  ;;  %v363_v6 = vsel %vm360_vm14, %v362_v62, %v358_v0 }
  0xa3   : > { %v315_v31 = vadd.s32 %v314_v28, %v313_v27 }
  0xa5   : > { %v316_v34 = vrot.slane %v315_v31, 4 }
  0xa7   : > { %v317_v37 = vadd.s32 %v316_v34, %v315_v31 }
  0xa9   : > { %v318_v40 = vrot.slane %v317_v37, 2 }
  0xab   : > { %v319_v45 = vadd.s32 %v318_v40, %v317_v37 }
  0xad   : > { %v320_v49 = vrot.slane %v319_v45, 1 }
  0xaf   : > { %v321_v57 = vadd.s32 %v320_v49, %v319_v45 }
  0xb1   : > { %v555_v63 = vadd.s32 4294967295, %v321_v57 }
  0xb3   : > { %vm323_vm4 = vcmp.lt.s32.totalorder %v555_v63, 0 }
  0xb4   : > { %v324_v5 = vsel %vm323_vm4, 19, %v555_v63 }
  0xb5   : > { %vm331_vm5 = vcmp.eq.s32.totalorder %v328_v56, %v324_v5  ;;  %vm329_vm6 = vcmp.eq.s32.totalorder %v326_v39, %v324_v5  ;;  %vm330_vm7 = vcmp.eq.s32.totalorder %v327_v61, %v324_v5 }
  0xb6   : > { %v337_v8 = vsel %vm331_vm5, %v637_v2, 0.0  ;;  %v335_v9 = vsel %vm329_vm6, %v637_v2, 0.0  ;;  %v336_v10 = vsel %vm330_vm7, %v637_v2, 0.0 }
  0xb7   : > { %v400_v11 = vmul.f32 %v393_v4, %v337_v8  ;;  %v398_v12 = vmul.f32 %v363_v6, %v335_v9  ;;  %v399_v13 = vmul.f32 %v378_v7, %v336_v10  ;;  %v397_v31 = vsel %vm308_vm0, %v337_v8, 1.0 }
  0xb8   : > { %v395_v34 = vsel %vm306_vm1, %v335_v9, 1.0  ;;  %v396_v36 = vsel %vm307_vm3, %v336_v10, 1.0 }
  0xb9   : > { %v403_v14 = vsub.f32 1.0, %v400_v11  ;;  %v401_v15 = vsub.f32 1.0, %v398_v12  ;;  %v402_v19 = vsub.f32 1.0, %v399_v13 }
  0xbb   : > { %v406_v20 = vsel %vm308_vm0, %v403_v14, %v393_v4  ;;  %v404_v23 = vsel %vm306_vm1, %v401_v15, %v363_v6  ;;  %v405_v24 = vsel %vm307_vm3, %v402_v19, %v378_v7 }
  0xbc   : > { %v409_v21 = vmax.f32 %v406_v20, 1e-06  ;;  %v407_v25 = vmax.f32 %v404_v23, 1e-06  ;;  %v408_v26 = vmax.f32 %v405_v24, 1e-06 }
  0xbe   : > { %650 = vlog2.f32 %v409_v21 }
  0xbf   : > { %652 = vlog2.f32 %v407_v25 }
  0xc0   : > { %654 = vlog2.f32 %v408_v26 }
  0xc4   : > { %v651_v27 = vpop.eup %650 }
  0xc5   : > { %v653_v28 = vpop.eup %652  ;;  %v415_v29 = vmul.f32 0.6931472, %v651_v27 }
  0xc6   : > { %v655_v30 = vpop.eup %654  ;;  %v411_v32 = vmul.f32 0.6931472, %v653_v28 }
  0xc7   : > { %v418_v33 = vmul.f32 %v415_v29, %v397_v31  ;;  %v413_v35 = vmul.f32 0.6931472, %v655_v30 }
  0xc8   : > { %v416_v37 = vmul.f32 %v411_v32, %v395_v34 }
  0xc9   : > { %v417_v38 = vmul.f32 %v413_v35, %v396_v36  ;;  %v421_v39 = vsel %vm312_vm2, %v418_v33, 0.0 }
  0xcb   : > { %v420_v40 = vadd.f32 %v417_v38, %v416_v37 }
  0xcd   : > { %v422_v17 = vadd.f32 %v421_v39, %v420_v40 }
  0xcf   : > { %423 = vadd.xlane.f32.xlu1 %v422_v17 }
 0x142   : > { %v424_v41 = vpop.xlane.xlu1 %423 }
 0x143   : > { %v425_v42 = vrot.slane %v424_v41, 4 }
 0x145   : > { %v426_v43 = vadd.f32 %v425_v42, %v424_v41 }
 0x147   : > { %v427_v44 = vrot.slane %v426_v43, 2 }
 0x149   : > { %v428_v16 = vadd.f32 %v427_v44, %v426_v43 }
 0x14b   : > { %v429_v45 = vrot.slane %v428_v16, 1 }
 0x14d   : > { %v430_v46 = vadd.f32 %v429_v45, %v428_v16 }
 0x14f   : > { %565 = vpush %v430_v46 }
 0x180   : > { %s566_s14 = spop %565 }
 0x181   : > { %v432_v18 = vstv %s566_s14 }
 0x182   : > { %434 = vst [vmem:[%s263_s27] sm:$0xff] %v432_v18 }
 0x183   : > { %713 = shalt.err (!%p710_p0)
}
 0x184   : > { %569 = dma.vmem_to_hbm [thread:$0]  (%p850_p9), %s449_s12, 128, %s451_s13, %s436_s21  }
 0x185 PF: > { %s462_s25 = sand.u32 1, %s748_s15   ;;  %p576_p1 = pnand %p551_p12, %p857_p11 }
 0x186   : > { %s463_s8 = scalar_lea.sflag [#allocation4], %s462_s25 }
 0x187   : > { %p577_p2 = pneg %p576_p1 }
 0x189   : > { %743 = dma.done.wait (%p577_p2), %s463_s8, 128  }
 0x18a   : > { %745 = vsyncadd (%p577_p2), %s463_s8, 4294967168  ;;  %s20_s20 = sadd.s32 1, %s768_s20   ;;  %s1050_s15 = smov %s752_s16 }
 0x18b   : > { %p17_p3 = scmp.ge.s32.totalorder %s20_s20, 4   ;;  %s1051_s16 = smov %s756_s17 }
 0x18c   : > { %s1052_s17 = smov %s855_s29  ;;  %s1053_s18 = smov %s764_s19 }
 0x18d   : > { %s1054_s19 = smov %s1056_s23  ;;  %19 = sbr.rel (!%p17_p3) target bundleno = 6 (0x6), region = 91 }
 0x192   :  { %469 = vsyncpa [#allocation3], 1 }
 0x193   :  { %471 = vsyncpa [#allocation3 + $0x1], 1 }
 0x194   :  { %472 = vsyncpa [#allocation4], 1 }
 0x195   :  { %474 = vsyncpa [#allocation4 + $0x1], 1 }

</bundles_post_ra>
